<compile_context>
chip_gen: v7x
topology: tpu7x:2x2x1
jax: 0.10.0
libtpu: 0.0.40
codegen_flags: <defaults>
</compile_context>

<pallas_src>
from functools import partial

import numpy as np
import jax
import jax.numpy as jnp
from jax.experimental import pallas as pl
from jax.experimental.pallas import tpu as pltpu

H = W = 4
P = H * W  # 16 spatial positions


def _build_shift_matrices():
    """S[t, p, q] = 1 if output position p reads input position q for 3x3 tap t (pad=1)."""
    S = np.zeros((9, P, P), np.float32)
    for ky in range(3):
        for kx in range(3):
            t = ky * 3 + kx
            for h in range(H):
                for w in range(W):
                    hi, wi = h + ky - 1, w + kx - 1
                    if 0 <= hi < H and 0 <= wi < W:
                        S[t, h * W + w, hi * W + wi] = 1.0
    return jnp.asarray(S)


def d_get_logits_kernel(x_ref, sent_ref, wp_ref, bp_ref, wbx_ref, wbc_ref,
                        w2p_ref, out_ref, *, split):
    """x_ref: (bB, P*C1); sent_ref: (bB, Td); wp_ref: (Td, Cc); bp_ref: (1, Cc);
       wbx_ref: (P*C1, NL); wbc_ref: (Cc, NL); w2p_ref: (NL, NL); out_ref: (bB, NL)."""
    # sentence projection (MXU): (bB, Cc)
    proj = jnp.dot(sent_ref[...], wp_ref[...],
                   preferred_element_type=jnp.float32) + bp_ref[...]

    # one big lane-dense matmul: cols [0:C1]=pool, [C1:C1+Cc]=proj, rest=conv acc
    lin = (jnp.dot(x_ref[...], wbx_ref[...], preferred_element_type=jnp.float32)
           + jnp.dot(proj, wbc_ref[...], preferred_element_type=jnp.float32))

    # LeakyReLU(0.2); applying it to the pool/proj columns is harmless because
    # those rows of w2p are zero.
    act = jnp.where(lin > 0, lin, 0.2 * lin)

    # 4x4 valid conv == full dot product; result lives in column `split`,
    # every other column of mfull is zero.
    mfull = jnp.dot(act, w2p_ref[...], preferred_element_type=jnp.float32)

    # pack: first `split` columns come from lin (pool|proj), the rest from mfull
    # (match at col `split`, zeros after).  Single unmasked 128-lane store.
    col = jax.lax.broadcasted_iota(jnp.int32, lin.shape, 1)
    out_ref[...] = jnp.where(col < split, lin, mfull)


def d_get_logits(x, sent, wp, bp, w1, w2, *, block_b=None):
    """x: (B, C1, 4, 4) NCHW;  sent: (B, Td);  wp: (Td, Cc);  bp: (Cc,);
       w1: (Cout1, C1+Cc, 3, 3) OIHW;  w2: (1, Cout1, 4, 4) OIHW."""
    B, C1 = x.shape[0], x.shape[1]
    Td, Cc = wp.shape
    Cout1, Ct = w1.shape[0], w1.shape[1]
    assert Ct == C1 + Cc

    split = C1 + Cc
    NL_raw = C1 + Cc + P * Cout1                       # 32 + 32 + 64 = 128
    NL = max(128, ((NL_raw + 127) // 128) * 128)       # lane-dense output width
    pad = NL - NL_raw

    # ---- glue: fold conv taps / pooling / identity into effective weights ----
    x_flat = jnp.transpose(x, (0, 2, 3, 1)).reshape(B, P * C1)        # (B, 512)
    w1_k = jnp.transpose(w1, (2, 3, 1, 0)).reshape(9, Ct, Cout1)      # (9, Ct, Cout1)
    S = _build_shift_matrices()                                       # (9, P, P)

    # W_eff[q, c, p, o] = sum_t S[t, p, q] * w1_k[t, c, o]
    W_eff = jnp.einsum('tpq,tco->qcpo', S, w1_k)                      # (P, Ct, P, Cout1)
    W_eff_x = W_eff[:, :C1].reshape(P * C1, P * Cout1)                # (512, 64)
    W_eff_c = W_eff[:, C1:].sum(axis=0).reshape(Cc, P * Cout1)        # (32, 64)

    pool_mat = jnp.tile(jnp.eye(C1, dtype=jnp.float32) / P, (P, 1))   # (512, 32)

    W_big_x = jnp.concatenate(
        [pool_mat,
         jnp.zeros((P * C1, Cc), jnp.float32),
         W_eff_x,
         jnp.zeros((P * C1, pad), jnp.float32)], axis=1)              # (512, NL)
    W_big_c = jnp.concatenate(
        [jnp.zeros((Cc, C1), jnp.float32),
         jnp.eye(Cc, dtype=jnp.float32),
         W_eff_c,
         jnp.zeros((Cc, pad), jnp.float32)], axis=1)                  # (Cc, NL)

    w2_flat = jnp.transpose(w2[0], (1, 2, 0)).reshape(P * Cout1)      # (64,)
    W2_pad = jnp.zeros((NL, NL), jnp.float32)
    W2_pad = W2_pad.at[split:split + P * Cout1, split].set(w2_flat)   # match -> col `split`

    bp_row = bp.reshape(1, Cc)

    # ---- grid over batch tiles (parallel -> both TCs on v7x, pipelined DMA) ----
    if block_b is None:
        block_b = B if B <= 256 else 256
    grid = (pl.cdiv(B, block_b),)

    in_specs = [
        pl.BlockSpec((block_b, P * C1), lambda i: (i, 0)),   # x_flat   (tiled over B)
        pl.BlockSpec((block_b, Td), lambda i: (i, 0)),       # sent     (tiled over B)
        pl.BlockSpec((Td, Cc), lambda i: (0, 0)),            # wp       (replicated)
        pl.BlockSpec((1, Cc), lambda i: (0, 0)),             # bp
        pl.BlockSpec((P * C1, NL), lambda i: (0, 0)),        # W_big_x
        pl.BlockSpec((Cc, NL), lambda i: (0, 0)),            # W_big_c
        pl.BlockSpec((NL, NL), lambda i: (0, 0)),            # W2_pad
    ]
    out_specs = pl.BlockSpec((block_b, NL), lambda i: (i, 0))

    packed = pl.pallas_call(
        partial(d_get_logits_kernel, split=split),
        out_shape=jax.ShapeDtypeStruct((B, NL), jnp.float32),
        grid=grid,
        in_specs=in_specs,
        out_specs=out_specs,
        compiler_params=pltpu.CompilerParams(dimension_semantics=("parallel",)),
    )(x_flat, sent, wp, bp_row, W_big_x, W_big_c, W2_pad)

    pool = packed[:, :C1]
    proj = packed[:, C1:C1 + Cc]
    match = packed[:, split:split + 1].reshape(B, 1, 1, 1)
    return [match, pool, proj]


def reference(x, sent, wp, bp, w1, w2):
    pool = jnp.mean(x, axis=(2, 3))
    proj = sent @ wp + bp
    c = jnp.broadcast_to(proj[:, :, None, None],
                         (proj.shape[0], proj.shape[1], H, W))
    hc = jnp.concatenate([x, c], axis=1)
    h1 = jax.lax.conv_general_dilated(
        hc, w1, (1, 1), ((1, 1), (1, 1)),
        dimension_numbers=('NCHW', 'OIHW', 'NCHW'))
    h1 = jnp.where(h1 > 0, h1, 0.2 * h1)
    m = jax.lax.conv_general_dilated(
        h1, w2, (1, 1), 'VALID',
        dimension_numbers=('NCHW', 'OIHW', 'NCHW'))
    return m, pool, proj


if __name__ == "__main__":
    # synthetic cfg: TEXT.EMBEDDING_DIM=8, DISC.SENT_MATCH=True, ndf=2
    B, ndf, text_dim = 2, 2, 8
    C1 = ndf * 16          # 32  (x channels)
    Cc = ndf * 16          # 32  (cond_dim, SENT_MATCH branch)
    Ct = C1 + Cc           # 64
    Cout1 = ndf * 2        # 4

    key = jax.random.PRNGKey(0)
    k = jax.random.split(key, 6)
    x = jax.random.normal(k[0], (B, C1, H, W), jnp.float32)
    sent = jax.random.normal(k[1], (B, text_dim), jnp.float32)
    wp = jax.random.normal(k[2], (text_dim, Cc), jnp.float32) * 0.1
    bp = jax.random.normal(k[3], (Cc,), jnp.float32) * 0.1
    w1 = jax.random.normal(k[4], (Cout1, Ct, 3, 3), jnp.float32) * 0.05
    w2 = jax.random.normal(k[5], (1, Cout1, H, W), jnp.float32) * 0.05

    match, pool, proj = d_get_logits(x, sent, wp, bp, w1, w2)
    jax.block_until_ready((match, pool, proj))

    m_ref, p_ref, pr_ref = reference(x, sent, wp, bp, w1, w2)
    np.testing.assert_allclose(np.asarray(match), np.asarray(m_ref), rtol=1e-4, atol=1e-4)
    np.testing.assert_allclose(np.asarray(pool), np.asarray(p_ref), rtol=1e-4, atol=1e-4)
    np.testing.assert_allclose(np.asarray(proj), np.asarray(pr_ref), rtol=1e-4, atol=1e-4)

    print("KERNEL_OK")
</pallas_src>

<mosaic_0001>
module attributes {stable_mosaic.version = 11 : i64} {
  func.func @d_get_logits_kernel(%arg0: i32, %arg1: memref<2x512xf32, #tpu.memory_space<vmem>>, %arg2: memref<2x8xf32, #tpu.memory_space<vmem>>, %arg3: memref<8x32xf32, #tpu.memory_space<vmem>>, %arg4: memref<1x32xf32, #tpu.memory_space<vmem>>, %arg5: memref<512x128xf32, #tpu.memory_space<vmem>>, %arg6: memref<32x128xf32, #tpu.memory_space<vmem>>, %arg7: memref<128x128xf32, #tpu.memory_space<vmem>>, %arg8: memref<2x128xf32, #tpu.memory_space<vmem>>) attributes {dimension_semantics = [#tpu.dimension_semantics<parallel>], iteration_bounds = array<i64: 1>, scalar_prefetch = 0 : i64, scratch_operands = 0 : i64, tpu.core_type = #tpu.core_type<tc>, window_params = [{transform_indices = @transform_0, window_bounds = array<i64: 2, 512>}, {transform_indices = @transform_1, window_bounds = array<i64: 2, 8>}, {pipeline_mode = #tpu.pipeline_mode<synchronous>, transform_indices = @transform_2, window_bounds = array<i64: 8, 32>}, {pipeline_mode = #tpu.pipeline_mode<synchronous>, transform_indices = @transform_3, window_bounds = array<i64: 1, 32>}, {pipeline_mode = #tpu.pipeline_mode<synchronous>, transform_indices = @transform_4, window_bounds = array<i64: 512, 128>}, {pipeline_mode = #tpu.pipeline_mode<synchronous>, transform_indices = @transform_5, window_bounds = array<i64: 32, 128>}, {pipeline_mode = #tpu.pipeline_mode<synchronous>, transform_indices = @transform_6, window_bounds = array<i64: 128, 128>}, {transform_indices = @transform_7, window_bounds = array<i64: 2, 128>}]} {
    %c0 = arith.constant 0 : index
    %c0_0 = arith.constant 0 : index
    %0 = vector.load %arg2[%c0, %c0_0] : memref<2x8xf32, #tpu.memory_space<vmem>>, vector<2x8xf32>
    %c0_1 = arith.constant 0 : index
    %c0_2 = arith.constant 0 : index
    %1 = vector.load %arg3[%c0_1, %c0_2] : memref<8x32xf32, #tpu.memory_space<vmem>>, vector<8x32xf32>
    %cst = arith.constant dense<0.000000e+00> : vector<2x32xf32>
    %2 = tpu.matmul %0, %1, %cst {dimension_numbers = #tpu.dot_dimension_numbers<[1], [0], [0], [1], [0, 0, 1, 1], [], []>} : vector<2x8xf32>, vector<8x32xf32>, vector<2x32xf32> -> vector<2x32xf32>
    %c0_3 = arith.constant 0 : index
    %c0_4 = arith.constant 0 : index
    %3 = vector.load %arg4[%c0_3, %c0_4] : memref<1x32xf32, #tpu.memory_space<vmem>>, vector<1x32xf32>
    %4 = vector.broadcast %3 : vector<1x32xf32> to vector<2x32xf32>
    %5 = arith.addf %2, %4 : vector<2x32xf32>
    %c0_5 = arith.constant 0 : index
    %c0_6 = arith.constant 0 : index
    %6 = vector.load %arg1[%c0_5, %c0_6] : memref<2x512xf32, #tpu.memory_space<vmem>>, vector<2x512xf32>
    %c0_7 = arith.constant 0 : index
    %c0_8 = arith.constant 0 : index
    %7 = vector.load %arg5[%c0_7, %c0_8] : memref<512x128xf32, #tpu.memory_space<vmem>>, vector<512x128xf32>
    %cst_9 = arith.constant dense<0.000000e+00> : vector<2x128xf32>
    %8 = tpu.matmul %6, %7, %cst_9 {dimension_numbers = #tpu.dot_dimension_numbers<[1], [0], [0], [1], [0, 0, 1, 1], [], []>} : vector<2x512xf32>, vector<512x128xf32>, vector<2x128xf32> -> vector<2x128xf32>
    %c0_10 = arith.constant 0 : index
    %c0_11 = arith.constant 0 : index
    %9 = vector.load %arg6[%c0_10, %c0_11] : memref<32x128xf32, #tpu.memory_space<vmem>>, vector<32x128xf32>
    %cst_12 = arith.constant dense<0.000000e+00> : vector<2x128xf32>
    %10 = tpu.matmul %5, %9, %cst_12 {dimension_numbers = #tpu.dot_dimension_numbers<[1], [0], [0], [1], [0, 0, 1, 1], [], []>} : vector<2x32xf32>, vector<32x128xf32>, vector<2x128xf32> -> vector<2x128xf32>
    %11 = arith.addf %8, %10 : vector<2x128xf32>
    %cst_13 = arith.constant 0.000000e+00 : f32
    %12 = vector.broadcast %cst_13 : f32 to vector<2x128xf32>
    %13 = arith.cmpf ogt, %11, %12 : vector<2x128xf32>
    %cst_14 = arith.constant 2.000000e-01 : f32
    %14 = vector.broadcast %cst_14 : f32 to vector<2x128xf32>
    %15 = arith.mulf %14, %11 : vector<2x128xf32>
    %16 = arith.select %13, %11, %15 : vector<2x128xi1>, vector<2x128xf32>
    %c0_15 = arith.constant 0 : index
    %c0_16 = arith.constant 0 : index
    %17 = vector.load %arg7[%c0_15, %c0_16] : memref<128x128xf32, #tpu.memory_space<vmem>>, vector<128x128xf32>
    %cst_17 = arith.constant dense<0.000000e+00> : vector<2x128xf32>
    %18 = tpu.matmul %16, %17, %cst_17 {dimension_numbers = #tpu.dot_dimension_numbers<[1], [0], [0], [1], [0, 0, 1, 1], [], []>} : vector<2x128xf32>, vector<128x128xf32>, vector<2x128xf32> -> vector<2x128xf32>
    %19 = tpu.iota {dimensions = array<i32: 1>} : vector<2x128xi32>
    %c64_i32 = arith.constant 64 : i32
    %20 = vector.broadcast %c64_i32 : i32 to vector<2x128xi32>
    %21 = arith.cmpi slt, %19, %20 : vector<2x128xi32>
    %22 = arith.select %21, %11, %18 : vector<2x128xi1>, vector<2x128xf32>
    %c0_18 = arith.constant 0 : index
    %c0_19 = arith.constant 0 : index
    %23 = vector.load %arg8[%c0_18, %c0_19] : memref<2x128xf32, #tpu.memory_space<vmem>>, vector<2x128xf32>
    tpu.vector_store %arg8[%c0_18, %c0_19], %22 {strides = array<i32>} : memref<2x128xf32, #tpu.memory_space<vmem>>, vector<2x128xf32>,
    return
  }
  func.func @transform_0(%arg0: i32) -> (i32, i32) {
    %c0_i32 = arith.constant 0 : i32
    %c0_i32_0 = arith.constant 0 : i32
    return %arg0, %c0_i32 : i32, i32
  }
  func.func @transform_1(%arg0: i32) -> (i32, i32) {
    %c0_i32 = arith.constant 0 : i32
    %c0_i32_0 = arith.constant 0 : i32
    return %arg0, %c0_i32 : i32, i32
  }
  func.func @transform_2(%arg0: i32) -> (i32, i32) {
    %c0_i32 = arith.constant 0 : i32
    %c0_i32_0 = arith.constant 0 : i32
    %c0_i32_1 = arith.constant 0 : i32
    return %c0_i32, %c0_i32_0 : i32, i32
  }
  func.func @transform_3(%arg0: i32) -> (i32, i32) {
    %c0_i32 = arith.constant 0 : i32
    %c0_i32_0 = arith.constant 0 : i32
    %c0_i32_1 = arith.constant 0 : i32
    return %c0_i32, %c0_i32_0 : i32, i32
  }
  func.func @transform_4(%arg0: i32) -> (i32, i32) {
    %c0_i32 = arith.constant 0 : i32
    %c0_i32_0 = arith.constant 0 : i32
    %c0_i32_1 = arith.constant 0 : i32
    return %c0_i32, %c0_i32_0 : i32, i32
  }
  func.func @transform_5(%arg0: i32) -> (i32, i32) {
    %c0_i32 = arith.constant 0 : i32
    %c0_i32_0 = arith.constant 0 : i32
    %c0_i32_1 = arith.constant 0 : i32
    return %c0_i32, %c0_i32_0 : i32, i32
  }
  func.func @transform_6(%arg0: i32) -> (i32, i32) {
    %c0_i32 = arith.constant 0 : i32
    %c0_i32_0 = arith.constant 0 : i32
    %c0_i32_1 = arith.constant 0 : i32
    return %c0_i32, %c0_i32_0 : i32, i32
  }
  func.func @transform_7(%arg0: i32) -> (i32, i32) {
    %c0_i32 = arith.constant 0 : i32
    %c0_i32_0 = arith.constant 0 : i32
    return %arg0, %c0_i32 : i32, i32
  }
}

</mosaic_0001>

<bundles_post_ra>
// kernel: tpu_custom_call.1
= control target key start
LH: loop header
LB: loop body
LE: loop exit
PB: predicated region body
PF: predicated region fallthrough
CT: control target
= control target key end

     0   :  { %12 = vsyncpa [#allocation3], 0  ;;  %s1148_s0 = inlined_call_operand.hbm [shape: f32[2,512], index: 0, kind: input, shape index: {}]   ;;  %s1149_s1 = inlined_call_operand.vmem [shape: f32[2,8], index: 1, kind: input, shape index: {}]   ;;  %s1150_s2 = inlined_call_operand.hbm [shape: f32[8,32], index: 2, kind: input, shape index: {}]   ;;  %s1151_s3 = inlined_call_operand.vmem [shape: f32[1,32], index: 3, kind: input, shape index: {}]   ;;  %s1152_s4 = inlined_call_operand.hbm [shape: f32[512,128], index: 4, kind: input, shape index: {}]   ;;  %s1153_s5 = inlined_call_operand.hbm [shape: f32[32,128], index: 5, kind: input, shape index: {}]   ;;  %s1154_s6 = inlined_call_operand.hbm [shape: f32[128,128], index: 6, kind: input, shape index: {}]   ;;  %s1155_s7 = inlined_call_operand.hbm [shape: f32[2,128], index: 7, kind: output, shape index: {}]  }
   0x1   :  { %13 = vsyncpa [#allocation6], 0 }
   0x2   :  { %14 = vsyncpa [#allocation9], 0 }
   0x3   :  { %15 = vsyncpa [#allocation4], 0  ;;  %s985_s24 = smov [#allocation5]   ;;  %s845_s28 = scalar_lea.hbm %s1150_s2, 128 }
   0x4   :  { %s34_s25 = sshll.u32 %s985_s24, 4  ;;  %p846_p0 = scmp.ne.s32.totalorder %s1150_s2, %s845_s28  ;;  %s35_s25 = int_to_ptr.vmem [resolvable:$true] %s34_s25 }
   0x5   :  { %p849_p1 = scmp.lt.u32.totalorder %s845_s28, %s1150_s2 }
   0x7   :  { %p851_p2 = pnand %p849_p1, %p846_p0 }
   0x9   :  { %854 = shalt.err (!%p851_p2)
}
   0xa   :  { %s855_s10 = scalar_lea.vmem %s35_s25, 128  ;;  %p860_p4 = scmp.lt.s32.totalorder %s35_s25, %s35_s25 }
   0xb   :  { %p856_p3 = scmp.ne.s32.totalorder %s35_s25, %s855_s10  ;;  %p861_p5 = scmp.lt.s32.totalorder %s855_s10, %s855_s10 }
   0xd   :  { %p862_p6 = por %p861_p5, %p860_p4 }
   0xf   :  { %p863_p7 = pnand %p862_p6, %p856_p3 }
  0x11   :  { %866 = shalt.err (!%p863_p7)
}
  0x12   :  { %37 = dma.hbm_to_vmem [thread:$0]  %s1150_s2, 128, %s35_s25, [#allocation6]  }
  0x13   :  { %s986_s13 = smov [#allocation8]   ;;  %s987_s15 = smov [#allocation2]  }
  0x14   :  { %s57_s14 = sshll.u32 %s986_s13, 4  ;;  %s22_s16 = sshll.u32 %s987_s15, 4  ;;  %s58_s14 = int_to_ptr.vmem [resolvable:$true] %s57_s14  ;;  %s23_s16 = int_to_ptr.vmem [resolvable:$true] %s22_s16 }
  0x15   :  { %s867_s19 = scalar_lea.hbm %s1153_s5, 512 }
  0x16   :  { %p868_p8 = scmp.ne.s32.totalorder %s1153_s5, %s867_s19  ;;  %p871_p9 = scmp.lt.u32.totalorder %s867_s19, %s1153_s5 }
  0x18   :  { %p873_p10 = pnand %p871_p9, %p868_p8 }
  0x1a   :  { %876 = shalt.err (!%p873_p10)
}
  0x1b   :  { %s877_s2 = scalar_lea.vmem %s58_s14, 512  ;;  %p882_p12 = scmp.lt.s32.totalorder %s58_s14, %s58_s14 }
  0x1c   :  { %p878_p11 = scmp.ne.s32.totalorder %s58_s14, %s877_s2  ;;  %p883_p13 = scmp.lt.s32.totalorder %s877_s2, %s877_s2 }
  0x1e   :  { %p884_p0 = por %p883_p13, %p882_p12 }
  0x20   :  { %p885_p1 = pnand %p884_p0, %p878_p11 }
  0x22   :  { %888 = shalt.err (!%p885_p1)
}
  0x23   :  { %s988_s24 = smov 128   ;;  %s989_s25 = smov 8  }
  0x24   :  { %63 = dma.hbm_to_vmem [thread:$0]  %s1153_s5, 512, %s58_s14, [#allocation9], %s988_s24, %s988_s24, %s989_s25  }
  0x25   :  { %s889_s30 = scalar_lea.hbm %s1148_s0, 128 }
  0x26   :  { %p890_p2 = scmp.ne.s32.totalorder %s1148_s0, %s889_s30  ;;  %p893_p3 = scmp.lt.u32.totalorder %s889_s30, %s1148_s0 }
  0x28   :  { %p895_p4 = pnand %p893_p3, %p890_p2 }
  0x2a   :  { %898 = shalt.err (!%p895_p4)
}
  0x2b   :  { %s899_s12 = scalar_lea.vmem %s23_s16, 128  ;;  %p904_p6 = scmp.lt.s32.totalorder %s23_s16, %s23_s16 }
  0x2c   :  { %p900_p5 = scmp.ne.s32.totalorder %s23_s16, %s899_s12  ;;  %p905_p7 = scmp.lt.s32.totalorder %s899_s12, %s899_s12 }
  0x2e   :  { %p906_p8 = por %p905_p7, %p904_p6 }
  0x30   :  { %p907_p9 = pnand %p906_p8, %p900_p5 }
  0x32   :  { %910 = shalt.err (!%p907_p9)
}
  0x33   :  { %25 = dma.hbm_to_vmem [thread:$0]  %s1148_s0, 128, %s23_s16, [#allocation3]  }
  0x34   :  { %s990_s14 = smov [#allocation7]   ;;  %s991_s17 = smov [#allocation10]  }
  0x35   :  { %s45_s15 = sshll.u32 %s990_s14, 4  ;;  %s69_s18 = sshll.u32 %s991_s17, 4  ;;  %s46_s15 = int_to_ptr.vmem [resolvable:$true] %s45_s15  ;;  %s70_s18 = int_to_ptr.vmem [resolvable:$true] %s69_s18 }
  0x36   :  { %s911_s21 = scalar_lea.hbm %s1152_s4, 8192 }
  0x37   :  { %p912_p10 = scmp.ne.s32.totalorder %s1152_s4, %s911_s21  ;;  %p915_p11 = scmp.lt.u32.totalorder %s911_s21, %s1152_s4 }
  0x39   :  { %p917_p12 = pnand %p915_p11, %p912_p10 }
  0x3b   :  { %920 = shalt.err (!%p917_p12)
}
  0x3c   :  { %s921_s0 = scalar_lea.vmem %s46_s15, 8192  ;;  %p926_p0 = scmp.lt.s32.totalorder %s46_s15, %s46_s15 }
  0x3d   :  { %p922_p13 = scmp.ne.s32.totalorder %s46_s15, %s921_s0  ;;  %p927_p1 = scmp.lt.s32.totalorder %s921_s0, %s921_s0 }
  0x3f   :  { %p928_p2 = por %p927_p1, %p926_p0 }
  0x41   :  { %p929_p3 = pnand %p928_p2, %p922_p13 }
  0x43   :  { %932 = shalt.err (!%p929_p3)
}
  0x44   :  { %51 = dma.hbm_to_vmem [thread:$0]  %s1152_s4, 8192, %s46_s15, [#allocation6], %s988_s24, %s988_s24, %s989_s25  }
  0x45   :  { %s933_s30 = scalar_lea.hbm %s1154_s6, 2048 }
  0x46   :  { %p934_p4 = scmp.ne.s32.totalorder %s1154_s6, %s933_s30  ;;  %p937_p5 = scmp.lt.u32.totalorder %s933_s30, %s1154_s6 }
  0x48   :  { %p939_p6 = pnand %p937_p5, %p934_p4 }
  0x4a   :  { %942 = shalt.err (!%p939_p6)
}
  0x4b   :  { %s943_s12 = scalar_lea.vmem %s70_s18, 2048  ;;  %p948_p8 = scmp.lt.s32.totalorder %s70_s18, %s70_s18 }
  0x4c   :  { %p944_p7 = scmp.ne.s32.totalorder %s70_s18, %s943_s12  ;;  %p949_p9 = scmp.lt.s32.totalorder %s943_s12, %s943_s12 }
  0x4e   :  { %p950_p10 = por %p949_p9, %p948_p8 }
  0x50   :  { %p951_p11 = pnand %p950_p10, %p944_p7 }
  0x52   :  { %954 = shalt.err (!%p951_p11)
}
  0x53   :  { %75 = dma.hbm_to_vmem [thread:$0]  %s1154_s6, 2048, %s70_s18, [#allocation9], %s988_s24, %s988_s24, %s989_s25  }
  0x54   :  { %977 = dma.done.wait [#allocation3], 128  }
  0x55   :  { %978 = vsyncadd [#allocation3], 4294967168 }
  0x56   :  { %979 = dma.done.wait [#allocation6], 8320  }
  0x57   :  { %980 = vsyncadd [#allocation6], 4294958976 }
  0x58   :  { %981 = dma.done.wait [#allocation9], 2560  }
  0x59   :  { %982 = vsyncadd [#allocation9], 4294964736  ;;  %v992_v0 = vmov 0.0   ;;  %vm993_vm0 = vmmov 0   ;;  %vm100_vm1 = vcmask 64512   ;;  %v92_v1 = vld [vmem:[#allocation5] sm:$0xff]  ;;  %v322_v9 = vlaneseq }
  0x5a   :  { %687 = vmatprep.subr.mxu1 %v992_v0  ;;  %689 = vmatprep.mubr.msk.f32.mxu1 %vm993_vm0, %v992_v0  ;;  %v91_v2 = vld [vmem:[%s1149_s1] sm:$0x3]  ;;  %v191_v3 = vld [vmem:[#allocation7 + $0x80] sm:$0xff]  ;;  %v192_v4 = vld [vmem:[#allocation7 + $0x88] sm:$0xff]  ;;  %v994_v7 = vmov 1983009808  }
  0x5b   :  { %688 = vmatpush3.msra.mxu1 %v92_v1  ;;  %v175_v5 = vld [vmem:[#allocation7] sm:$0xff]  ;;  %v176_v6 = vld [vmem:[#allocation7 + $0x8] sm:$0xff]  ;;  %v320_v8 = vunpack.c.l.s4 %v994_v7  ;;  %v744_v10 = vpack.c.bf16 %v192_v4, %v191_v3  ;;  %v193_v12 = vld [vmem:[#allocation7 + $0x90] sm:$0xff]  ;;  %v995_v15 = vmov 0.0|0.0   ;;  %v323_v22 = vshrl.u32 %v322_v9, 7 }
  0x5c   :  { %690 = vmatmul.mubr.msk.f32.vlgmr.msra.gmra.mrb[0].mxu1 %vm100_vm1, %v91_v2  ;;  %v746_v11 = vpack.c.bf16 %v176_v6, %v175_v5  ;;  %v194_v13 = vld [vmem:[#allocation7 + $0x98] sm:$0xff]  ;;  %v177_v14 = vld [vmem:[#allocation7 + $0x10] sm:$0xff]  ;;  %738 = vmatprep.subr.bf16.mxu1 %v995_v15  ;;  %v195_v18 = vld [vmem:[#allocation7 + $0xa0] sm:$0xff]  ;;  %vm243_vm2 = vcmask 261120  }
  0x5d   :  { %v748_v16 = vpack.c.bf16 %v194_v13, %v193_v12  ;;  %v178_v17 = vld [vmem:[#allocation7 + $0x18] sm:$0xff]  ;;  %v196_v19 = vld [vmem:[#allocation7 + $0xa8] sm:$0xff]  ;;  %700 = vmatprep.mubr.msk.f32.mxu1 %vm993_vm0, %v992_v0  ;;  %745 = vmatprep.subr.bf16.mxu0 %v744_v10  ;;  %v321_v21 = vunpack.c.0.s8 %v320_v8  ;;  %v179_v24 = vld [vmem:[#allocation7 + $0x20] sm:$0xff] }
  0x5e   :  { %747 = vmatpush3.bf16.msra.mxu0 %v746_v11  ;;  %v750_v20 = vpack.c.bf16 %v178_v17, %v177_v14  ;;  %v752_v23 = vpack.c.bf16 %v196_v19, %v195_v18  ;;  %v180_v25 = vld [vmem:[#allocation7 + $0x28] sm:$0xff]  ;;  %v197_v26 = vld [vmem:[#allocation7 + $0xb0] sm:$0xff]  ;;  %v198_v27 = vld [vmem:[#allocation7 + $0xb8] sm:$0xff] }
  0x5f   :  { %749 = vmatprep.subr.bf16.mxu0 %v748_v16  ;;  %v754_v28 = vpack.c.bf16 %v180_v25, %v179_v24  ;;  %v181_v29 = vld [vmem:[#allocation7 + $0x30] sm:$0xff]  ;;  %v324_v30 = vsub.s32 %v321_v21, %v323_v22  ;;  %v756_v31 = vpack.c.bf16 %v198_v27, %v197_v26  ;;  %v182_v32 = vld [vmem:[#allocation7 + $0x38] sm:$0xff]  ;;  %v239_v33 = vld [vmem:[#allocation8] sm:$0xff] }
  0x60   :  { %v240_v34 = vld [vmem:[#allocation8 + $0x8] sm:$0xff]  ;;  %v199_v35 = vld [vmem:[#allocation7 + $0xc0] sm:$0xff]  ;;  %v241_v38 = vld [vmem:[#allocation8 + $0x10] sm:$0xff]  ;;  %v758_v41 = vpack.c.bf16 %v182_v32, %v181_v29 }
  0x61   :  { %v200_v36 = vld [vmem:[#allocation7 + $0xc8] sm:$0xff]  ;;  %v739_v37 = vpack.c.bf16 %v240_v34, %v239_v33  ;;  %v242_v39 = vld [vmem:[#allocation8 + $0x18] sm:$0xff]  ;;  %v174_v40 = vld [vmem:[#allocation2] sm:$0xff] }
  0x62   :  { %751 = vmatpush3.bf16.msra.mxu0 %v750_v20  ;;  %v742_v42 = vpack.c.bf16 %v242_v39, %v241_v38  ;;  %v325_v43 = vrot.slane %v174_v40, %v324_v30  ;;  %v760_v44 = vpack.c.bf16 %v200_v36, %v199_v35  ;;  %v183_v45 = vld [vmem:[#allocation7 + $0x40] sm:$0xff]  ;;  %v184_v46 = vld [vmem:[#allocation7 + $0x48] sm:$0xff]  ;;  %v201_v47 = vld [vmem:[#allocation7 + $0xd0] sm:$0xff]  ;;  %v318_v7 = vcombine.high %v174_v40, %v174_v40 }
  0x63   :  { %753 = vmatprep.subr.bf16.mxu0 %v752_v23  ;;  %740 = vmatpush3.bf16.msra.mxu1 %v739_v37  ;;  %v202_v48 = vld [vmem:[#allocation7 + $0xd8] sm:$0xff]  ;;  %v762_v50 = vpack.c.bf16 %v184_v46, %v183_v45  ;;  %v185_v52 = vld [vmem:[#allocation7 + $0x50] sm:$0xff]  ;;  %v203_v54 = vld [vmem:[#allocation7 + $0xe0] sm:$0xff] }
  0x64   :  { %741 = vmatprep.subr.bf16.mxu1 %v995_v15  ;;  %v333_v49 = vcombine.high %v325_v43, %v325_v43  ;;  %v764_v51 = vpack.c.bf16 %v202_v48, %v201_v47  ;;  %v186_v53 = vld [vmem:[#allocation7 + $0x58] sm:$0xff]  ;;  %v204_v55 = vld [vmem:[#allocation7 + $0xe8] sm:$0xff]  ;;  %v187_v58 = vld [vmem:[#allocation7 + $0x60] sm:$0xff]  ;;  %v1120_v8 = vrot.slane %v318_v7, %v324_v30 }
  0x65   :  { %v766_v56 = vpack.c.bf16 %v186_v53, %v185_v52  ;;  %v768_v57 = vpack.c.bf16 %v204_v55, %v203_v54  ;;  %v188_v59 = vld [vmem:[#allocation7 + $0x68] sm:$0xff]  ;;  %v205_v60 = vld [vmem:[#allocation7 + $0xf0] sm:$0xff]  ;;  %v206_v61 = vld [vmem:[#allocation7 + $0xf8] sm:$0xff] }
  0x66   :  { %755 = vmatpush3.bf16.msra.mxu0 %v754_v28  ;;  %403 = vmatprep.mubr.f32.mxu0 %v333_v49  ;;  %v770_v62 = vpack.c.bf16 %v188_v59, %v187_v58  ;;  %v772_v63 = vpack.c.bf16 %v206_v61, %v205_v60  ;;  %v189_v1 = vld [vmem:[#allocation7 + $0x70] sm:$0xff]  ;;  %v190_v2 = vld [vmem:[#allocation7 + $0x78] sm:$0xff]  ;;  %v223_v4 = vld [vmem:[#allocation7 + $0x180] sm:$0xff] }
  0x67   :  { %757 = vmatprep.subr.bf16.mxu0 %v756_v31  ;;  %743 = vmatpush3.bf16.msra.mxu1 %v742_v42  ;;  %v774_v3 = vpack.c.bf16 %v190_v2, %v189_v1  ;;  %v224_v5 = vld [vmem:[#allocation7 + $0x188] sm:$0xff]  ;;  %v207_v10 = vld [vmem:[#allocation7 + $0x100] sm:$0xff]  ;;  %v590_v12 = vld [vmem:[%s1151_s3] ss:$0 sm:$0xff]  ;;  %s996_s3 = smov [#allocation11]  }
  0x68   :  { %v776_v6 = vpack.c.bf16 %v224_v5, %v223_v4  ;;  %v208_v11 = vld [vmem:[#allocation7 + $0x108] sm:$0xff]  ;;  %v225_v13 = vld [vmem:[#allocation7 + $0x190] sm:$0xff]  ;;  %v226_v14 = vld [vmem:[#allocation7 + $0x198] sm:$0xff]  ;;  %s579_s24 = sshll.u32 %s996_s3, 4  ;;  %s580_s24 = int_to_ptr.vmem [resolvable:$true] %s579_s24 }
  0x69   :  { %v778_v17 = vpack.c.bf16 %v208_v11, %v207_v10  ;;  %v780_v20 = vpack.c.bf16 %v226_v14, %v225_v13  ;;  %v209_v21 = vld [vmem:[#allocation7 + $0x110] sm:$0xff]  ;;  %v210_v22 = vld [vmem:[#allocation7 + $0x118] sm:$0xff]  ;;  %v227_v23 = vld [vmem:[#allocation7 + $0x1a0] sm:$0xff]  ;;  %s955_s25 = scalar_lea.vmem %s580_s24, 32  ;;  %p960_p13 = scmp.lt.s32.totalorder %s580_s24, %s580_s24 }
  0x6a   :  { %759 = vmatpush3.bf16.msra.mxu0 %v758_v41  ;;  %777 = vmatprep.subr.bf16.mxu1 %v776_v6  ;;  %v228_v24 = vld [vmem:[#allocation7 + $0x1a8] sm:$0xff]  ;;  %v782_v25 = vpack.c.bf16 %v210_v22, %v209_v21  ;;  %v211_v27 = vld [vmem:[#allocation7 + $0x120] sm:$0xff]  ;;  %v229_v29 = vld [vmem:[#allocation7 + $0x1b0] sm:$0xff]  ;;  %p956_p12 = scmp.ne.s32.totalorder %s580_s24, %s955_s25  ;;  %p961_p0 = scmp.lt.s32.totalorder %s955_s25, %s955_s25 }
  0x6b   :  { %761 = vmatprep.subr.bf16.mxu0 %v760_v44  ;;  %v784_v26 = vpack.c.bf16 %v228_v24, %v227_v23  ;;  %v212_v28 = vld [vmem:[#allocation7 + $0x128] sm:$0xff]  ;;  %v230_v30 = vld [vmem:[#allocation7 + $0x1b8] sm:$0xff]  ;;  %v213_v33 = vld [vmem:[#allocation7 + $0x130] sm:$0xff] }
  0x6c   :  { %v786_v31 = vpack.c.bf16 %v212_v28, %v211_v27  ;;  %v788_v32 = vpack.c.bf16 %v230_v30, %v229_v29  ;;  %v214_v34 = vld [vmem:[#allocation7 + $0x138] sm:$0xff]  ;;  %v231_v35 = vld [vmem:[#allocation7 + $0x1c0] sm:$0xff]  ;;  %v232_v36 = vld [vmem:[#allocation7 + $0x1c8] sm:$0xff]  ;;  %p962_p1 = por %p961_p0, %p960_p13 }
  0x6d   :  { %v790_v37 = vpack.c.bf16 %v214_v34, %v213_v33  ;;  %v792_v38 = vpack.c.bf16 %v232_v36, %v231_v35  ;;  %v215_v39 = vld [vmem:[#allocation7 + $0x140] sm:$0xff]  ;;  %v216_v40 = vld [vmem:[#allocation7 + $0x148] sm:$0xff]  ;;  %v233_v41 = vld [vmem:[#allocation7 + $0x1d0] sm:$0xff]  ;;  %v569_v34 = vand.u32 127, %v322_v9 }
  0x6e   :  { %763 = vmatpush3.bf16.msra.mxu0 %v762_v50  ;;  %v234_v42 = vld [vmem:[#allocation7 + $0x1d8] sm:$0xff]  ;;  %v217_v45 = vld [vmem:[#allocation7 + $0x150] sm:$0xff]  ;;  %v235_v47 = vld [vmem:[#allocation7 + $0x1e0] sm:$0xff]  ;;  %p963_p2 = pnand %p962_p1, %p956_p12 }
  0x6f   :  { %765 = vmatprep.subr.bf16.mxu0 %v764_v51  ;;  %v796_v44 = vpack.c.bf16 %v234_v42, %v233_v41  ;;  %v218_v46 = vld [vmem:[#allocation7 + $0x158] sm:$0xff]  ;;  %v236_v48 = vld [vmem:[#allocation7 + $0x1e8] sm:$0xff]  ;;  %v219_v51 = vld [vmem:[#allocation7 + $0x160] sm:$0xff]  ;;  %vm570_vm4 = vcmp.lt.s32.totalorder %v569_v34, 64 }
  0x70   :  { %v798_v49 = vpack.c.bf16 %v218_v46, %v217_v45  ;;  %v800_v50 = vpack.c.bf16 %v236_v48, %v235_v47  ;;  %v220_v52 = vld [vmem:[#allocation7 + $0x168] sm:$0xff]  ;;  %v237_v53 = vld [vmem:[#allocation7 + $0x1f0] sm:$0xff]  ;;  %v238_v54 = vld [vmem:[#allocation7 + $0x1f8] sm:$0xff] }
  0x71   :  { %v802_v55 = vpack.c.bf16 %v220_v52, %v219_v51  ;;  %v222_v58 = vld [vmem:[#allocation7 + $0x178] sm:$0xff]  ;;  %v483_v1 = vld [vmem:[#allocation10 + $0x8] sm:$0xff]  ;;  %v484_v2 = vld [vmem:[#allocation10 + $0x10] sm:$0xff] }
  0x72   :  { %767 = vmatpush3.bf16.msra.mxu0 %v766_v56  ;;  %v804_v56 = vpack.c.bf16 %v238_v54, %v237_v53  ;;  %v485_v4 = vld [vmem:[#allocation10 + $0x18] sm:$0xff]  ;;  %v486_v6 = vld [vmem:[#allocation10 + $0x20] sm:$0xff]  ;;  %v487_v7 = vld [vmem:[#allocation10 + $0x28] sm:$0xff] }
  0x73   :  { %769 = vmatprep.subr.bf16.mxu0 %v768_v57  ;;  %v221_v57 = vld [vmem:[#allocation7 + $0x170] sm:$0xff]  ;;  %v812_v5 = vpack.c.bf16 %v485_v4, %v484_v2  ;;  %v815_v10 = vpack.c.bf16 %v487_v7, %v486_v6  ;;  %v490_v13 = vld [vmem:[#allocation10 + $0x40] sm:$0xff]  ;;  %v491_v14 = vld [vmem:[#allocation10 + $0x48] sm:$0xff] }
  0x74   :  { %v806_v59 = vpack.c.bf16 %v222_v58, %v221_v57  ;;  %v488_v11 = vld [vmem:[#allocation10 + $0x30] sm:$0xff]  ;;  %v497_v23 = vld [vmem:[#allocation10 + $0x78] sm:$0xff] }
  0x75   :  { %v496_v22 = vld [vmem:[#allocation10 + $0x70] sm:$0xff] }
  0x76   :  { %771 = vmatpush3.bf16.msra.mxu0 %v770_v62  ;;  %v830_v24 = vpack.c.bf16 %v497_v23, %v496_v22 }
  0x77   :  { %773 = vmatprep.subr.bf16.mxu0 %v772_v63  ;;  %v482_v63 = vld [vmem:[#allocation10] sm:$0xff] }
  0x7a   :  { %775 = vmatpush3.bf16.msra.mxu0 %v774_v3  ;;  %v809_v3 = vpack.c.bf16 %v483_v1, %v482_v63 }
  0x7b   :  { %808 = vmatprep.subr.bf16.mxu0 %v995_v15 }
  0x7d   :  { %404 = vmatmul.mubr.f32.vlgmr.msra.gmra.mrb[0].mxu0 %v325_v43  ;;  %v794_v43 = vpack.c.bf16 %v216_v40, %v215_v39 }
  0x7e   :  { %735 = vmatprep.mubr.msk.f32.mxu0 %vm993_vm0, %v992_v0  ;;  %v334_v0 = vcombine.high %v1120_v8, %v1120_v8  ;;  %810 = vmatpush3.bf16.msra.mxu0 %v809_v3 }
  0x7f   :  { %811 = vmatprep.subr.bf16.mxu0 %v995_v15 }
  0x82   :  { %813 = vmatpush3.bf16.msra.mxu0 %v812_v5 }
  0x83   :  { %814 = vmatprep.subr.bf16.mxu0 %v995_v15 }
  0x86   :  { %816 = vmatpush3.bf16.msra.mxu0 %v815_v10 }
  0x87   :  { %817 = vmatprep.subr.bf16.mxu0 %v995_v15 }
 0x12f   :  { %v170_v16 = vpop.f32.mrb[0].mxu1 }
 0x130   :  { %v171_v18 = vadd.f32 %v590_v12, %v170_v16  ;;  %v691_v19 = vpop.f32.mrb[1].mxu1  ;;  %v489_v12 = vld [vmem:[#allocation10 + $0x38] sm:$0xff]  ;;  %v821_v16 = vpack.c.bf16 %v491_v14, %v490_v13 }
 0x131   :  { %v494_v19 = vld [vmem:[#allocation10 + $0x60] sm:$0xff] }
 0x132   :  { %701 = vmatmul.mubr.msk.f32.vlgmr.msra.gmra.mrb[2].mxu1 %vm243_vm2, %v171_v18 }
 0x133   :  { %779 = vmatpush3.bf16.msra.mxu1 %v778_v17  ;;  %473 = vmatprep.mubr.f32.mxu1 %v334_v0  ;;  %v492_v17 = vld [vmem:[#allocation10 + $0x50] sm:$0xff]  ;;  %v493_v0 = vld [vmem:[#allocation10 + $0x58] sm:$0xff] }
 0x134   :  { %781 = vmatprep.subr.bf16.mxu1 %v780_v20  ;;  %v824_v18 = vpack.c.bf16 %v493_v0, %v492_v17  ;;  %v495_v20 = vld [vmem:[#allocation10 + $0x68] sm:$0xff] }
 0x135   :  { %v827_v21 = vpack.c.bf16 %v495_v20, %v494_v19 }
 0x137   :  { %783 = vmatpush3.bf16.msra.mxu1 %v782_v25 }
 0x138   :  { %785 = vmatprep.subr.bf16.mxu1 %v784_v26 }
 0x13b   :  { %787 = vmatpush3.bf16.msra.mxu1 %v786_v31 }
 0x13c   :  { %789 = vmatprep.subr.bf16.mxu1 %v788_v32 }
 0x13f   :  { %791 = vmatpush3.bf16.msra.mxu1 %v790_v37 }
 0x140   :  { %793 = vmatprep.subr.bf16.mxu1 %v792_v38 }
 0x143   :  { %795 = vmatpush3.bf16.msra.mxu1 %v794_v43 }
 0x144   :  { %797 = vmatprep.subr.bf16.mxu1 %v796_v44 }
 0x147   :  { %799 = vmatpush3.bf16.msra.mxu1 %v798_v49 }
 0x148   :  { %801 = vmatprep.subr.bf16.mxu1 %v800_v50 }
 0x14b   :  { %803 = vmatpush3.bf16.msra.mxu1 %v802_v55 }
 0x14c   :  { %805 = vmatprep.subr.bf16.mxu1 %v804_v56 }
 0x14f   :  { %807 = vmatpush3.bf16.msra.mxu1 %v806_v59 }
 0x150   :  { %v632_v60 = vpop.f32.mrb[0].mxu0 }
 0x151   :  { %v633_v61 = vpop.f32.mrb[1].mxu0 }
 0x152   :  { %474 = vmatmul.mubr.f32.vlgmr.msra.gmra.mrb[4].mxu1 %v1120_v8  ;;  %v634_v62 = vadd.f32 %v633_v61, %v632_v60  ;;  %v818_v8 = vpack.c.bf16 %v489_v12, %v488_v11 }
 0x154   :  { %819 = vmatpush3.bf16.msra.mxu0 %v818_v8 }
 0x155   :  { %820 = vmatprep.subr.bf16.mxu0 %v995_v15 }
 0x158   :  { %822 = vmatpush3.bf16.msra.mxu0 %v821_v16 }
 0x159   :  { %823 = vmatprep.subr.bf16.mxu0 %v995_v15 }
 0x15c   :  { %825 = vmatpush3.bf16.msra.mxu0 %v824_v18 }
 0x15d   :  { %826 = vmatprep.subr.bf16.mxu0 %v995_v15 }
 0x160   :  { %828 = vmatpush3.bf16.msra.mxu0 %v827_v21 }
 0x161   :  { %829 = vmatprep.subr.bf16.mxu0 %v995_v15 }
 0x164   :  { %831 = vmatpush3.bf16.msra.mxu0 %v830_v24 }
 0x205   :  { %v313_v25 = vpop.f32.mrb[2].mxu1 }
 0x206   :  { %v406_v26 = vadd.f32 %v634_v62, %v313_v25  ;;  %v702_v27 = vpop.f32.mrb[3].mxu1 }
 0x225   :  { %v667_v28 = vpop.f32.mrb[4].mxu1 }
 0x226   :  { %v668_v29 = vpop.f32.mrb[5].mxu1 }
 0x227   :  { %v669_v30 = vadd.f32 %v668_v29, %v667_v28 }
 0x229   :  { %v476_v31 = vadd.f32 %v669_v30, %v406_v26 }
 0x22b   :  { %vm479_vm3 = vcmp.gt.f32.partialorder %v476_v31, 0.0  ;;  %v480_v32 = vmul.f32 0.2, %v476_v31 }
 0x22d   :  { %v481_v33 = vsel %vm479_vm3, %v476_v31, %v480_v32 }
 0x22e   :  { %736 = vmatmul.mubr.f32.vlgmr.msra.gmra.mrb[2].mxu0 %v481_v33 }
 0x301   :  { %v564_v15 = vpop.f32.mrb[2].mxu0 }
 0x302   :  { %v571_v35 = vsel %vm570_vm4, %v476_v31, %v564_v15  ;;  %v737_v36 = vpop.f32.mrb[3].mxu0 }
 0x303   :  { %572 = vst [vmem:[#allocation11] sm:$0x3] %v571_v35 }
 0x304   :  { %966 = shalt.err (!%p963_p2)
}
 0x305   :  { %s967_s18 = scalar_lea.hbm %s1155_s7, 32 }
 0x306   :  { %p968_p3 = scmp.ne.s32.totalorder %s1155_s7, %s967_s18  ;;  %p971_p4 = scmp.lt.u32.totalorder %s967_s18, %s1155_s7 }
 0x308   :  { %p973_p5 = pnand %p971_p4, %p968_p3 }
 0x30a   :  { %976 = shalt.err (!%p973_p5)
}
 0x30b   :  { %582 = dma.vmem_to_hbm [thread:$0]  %s580_s24, 32, %s1155_s7, [#allocation4]  }
 0x30c   :  { %983 = dma.done.wait [#allocation4], 32  }
 0x30d   :  { %984 = vsyncadd [#allocation4], 4294967264 }
 0x30e   :  { %586 = vsyncpa [#allocation3], 1 }
 0x30f   :  { %587 = vsyncpa [#allocation6], 1 }
 0x310   :  { %588 = vsyncpa [#allocation9], 1 }
 0x311   :  { %589 = vsyncpa [#allocation4], 1 }

</bundles_post_ra>
